<compile_context>
chip_gen: v5e
topology: v5e:2x2
jax: 0.10.0
libtpu: 0.0.40
codegen_flags: <defaults>
</compile_context>

<pallas_src>
import sys

import jax
import jax.numpy as jnp
from jax.experimental import pallas as pl
from jax.experimental.pallas import tpu as pltpu


def _round_up(a, b):
    return (a + b - 1) // b * b


def _vmem_budget_bytes():
    """Per-generation VMEM budget (v5e/v6e: 128 MiB, v7x: 64 MiB physical)."""
    try:
        info = pltpu.get_tpu_info()
        cap = getattr(info, "vmem_capacity_bytes", None)
        if cap:
            return int(cap) * 3 // 4
    except Exception:
        pass
    return 48 * 1024 * 1024  # conservative default, safe on every generation


def _choose_bh(N, Cin, Cout, Ho, Wo, in_itemsize, out_itemsize, budget, native):
    """Largest output-row block `bh` whose double-buffered VMEM tiles fit `budget`."""

    def tile_bytes(bh):
        bs = bh * Wo
        if native:
            # VMEM tile is (Cin, bh, Wo): lane dim pads Wo up to 128.
            x_t = Cin * _round_up(bh, 8) * _round_up(Wo, 128) * in_itemsize
        else:
            x_t = _round_up(Cin, 8) * _round_up(bs, 128) * in_itemsize
        o_t = _round_up(Cout, 8) * _round_up(bs, 128) * out_itemsize
        w_t = _round_up(Cout, 8) * _round_up(Cin, 128) * in_itemsize
        b_t = _round_up(Cout, 8) * 128 * 4
        return 2 * (x_t + o_t) + 2 * (w_t + b_t) + (64 << 10)

    def legal(bh):
        # Output block's trailing dim (bh*Wo) must be full S or a multiple of 128.
        return bh == Ho or (bh * Wo) % 128 == 0

    cands = [d for d in range(Ho, 0, -1) if Ho % d == 0 and legal(d)]
    fits = [d for d in cands if tile_bytes(d) <= budget]
    if not fits:
        return None
    if N == 1 and fits[0] == Ho and len(fits) > 1:
        return fits[1]  # guarantee >=2 grid steps so v7x's two TensorCores both work
    return fits[0]


def _conv1x1_bn_kernel(x_ref, w_ref, b_ref, o_ref):
    # x_ref: (Cin, bh, Wo)  [native path]   or (Cin, bh*Wo) [pre-pass path]
    # w_ref: (Cout, Cin)    BN-scale-folded conv weight (VMEM-resident)
    # b_ref: (Cout, 1)      BN bias (f32)
    # o_ref: (Cout, bh*Wo)  flattened-NCHW output tile (lane-dense)
    x = x_ref[...]
    x = x.reshape(x.shape[0], -1)  # flatten spatial onto lanes (no-op on pre-pass path)
    acc = jnp.dot(w_ref[...], x, preferred_element_type=jnp.float32)
    o_ref[...] = (acc + b_ref[...]).astype(o_ref.dtype)


def _run_conv1x1_bn(x, w_fold, b2d, stride, Ho, Wo, *, native):
    N, Cin, H, W = x.shape
    Cout = w_fold.shape[0]
    S = Ho * Wo
    in_itemsize = jnp.dtype(x.dtype).itemsize
    out_itemsize = in_itemsize  # output keeps the activation dtype

    budget = _vmem_budget_bytes()
    bh = _choose_bh(N, Cin, Cout, Ho, Wo, in_itemsize, out_itemsize, budget, native)
    if bh is None:
        bh = Ho  # last resort; compiler will report if it genuinely cannot fit
    bs = bh * Wo
    n_h = Ho // bh

    if native:
        # Metadata-only view: H -> (Ho, stride), W -> (Wo, stride).  The BlockSpec
        # squeezes both stride axes at phase 0, i.e. rows h*stride / cols w*stride,
        # so the strided spatial subsample happens inside the DMA (no HBM pre-pass).
        x_in = x.reshape(N, Cin, Ho, stride, Wo, stride)
        x_spec = pl.BlockSpec((None, Cin, bh, None, Wo, None),
                              lambda n, h: (n, 0, h, 0, 0, 0))
    else:
        # Fallback: one strided-slice pre-pass (elided when stride == 1), still no
        # transposes; the reshape to (N, Cin, S) is metadata-only.
        x_in = x[:, :, ::stride, ::stride].reshape(N, Cin, S)
        x_spec = pl.BlockSpec((None, Cin, bs), lambda n, h: (n, 0, h))

    cost = pl.CostEstimate(
        flops=2 * N * S * Cin * Cout,
        transcendentals=0,
        bytes_accessed=(in_itemsize * (N * Cin * S + Cin * Cout)
                        + 4 * Cout
                        + out_itemsize * N * Cout * S),
    )

    out_flat = pl.pallas_call(
        _conv1x1_bn_kernel,
        out_shape=jax.ShapeDtypeStruct((N, Cout, S), x.dtype),
        grid_spec=pltpu.PrefetchScalarGridSpec(
            num_scalar_prefetch=0,
            grid=(N, n_h),
            in_specs=[
                x_spec,
                # Constant block index -> weight/bias DMAed once, VMEM-resident.
                pl.BlockSpec((Cout, Cin), lambda n, h: (0, 0)),
                pl.BlockSpec((Cout, 1), lambda n, h: (0, 0)),
            ],
            out_specs=pl.BlockSpec((None, Cout, bs), lambda n, h: (n, 0, h)),
        ),
        compiler_params=pltpu.CompilerParams(
            dimension_semantics=("parallel", "parallel"),
            vmem_limit_bytes=budget,
        ),
        cost_estimate=cost,
    )(x_in, w_fold, b2d)

    return out_flat.reshape(N, Cout, Ho, Wo)  # metadata-only


def downsample_pallas(x, conv_weight, gamma, beta, running_mean, running_var,
                      stride, eps=1e-5):
    """conv1x1(stride, bias=False) + BatchNorm2d(eval).  x: (N, Cin, H, W)."""
    N, Cin, H, W = x.shape
    Cout = conv_weight.shape[0]
    Ho = (H - 1) // stride + 1
    Wo = (W - 1) // stride + 1

    # Fold BatchNorm (running stats, eval mode) into the conv weight + a bias.
    scale = (gamma / jnp.sqrt(running_var + eps)).astype(jnp.float32)        # (Cout,)
    bias = (beta.astype(jnp.float32)
            - running_mean.astype(jnp.float32) * scale)                      # (Cout,)
    w_fold = (conv_weight[:, :, 0, 0].astype(jnp.float32)
              * scale[:, None]).astype(x.dtype)                              # (Cout, Cin)
    b2d = bias.reshape(Cout, 1)

    native_ok = (H == Ho * stride) and (W == Wo * stride)
    if native_ok:
        try:
            return _run_conv1x1_bn(x, w_fold, b2d, stride, Ho, Wo, native=True)
        except Exception as e:  # lowering not supported on this toolchain -> log + fall back
            print(f"[downsample_pallas] native stride-folded path failed "
                  f"({type(e).__name__}: {e}); using strided-slice pre-pass path.",
                  file=sys.stderr)
    return _run_conv1x1_bn(x, w_fold, b2d, stride, Ho, Wo, native=False)


def downsample_reference(x, conv_weight, gamma, beta, running_mean, running_var,
                         stride, eps=1e-5):
    # Pure-JAX f32 reference of conv1x1(stride, bias=False) + BatchNorm2d(eval).
    x_s = x.astype(jnp.float32)[:, :, ::stride, ::stride]
    w = conv_weight[:, :, 0, 0].astype(jnp.float32)
    y = jnp.einsum('nchw,oc->nohw', x_s, w, precision=jax.lax.Precision.HIGHEST)
    scale = (gamma / jnp.sqrt(running_var + eps)).reshape(1, -1, 1, 1)
    shift = (beta - running_mean * gamma / jnp.sqrt(running_var + eps)).reshape(1, -1, 1, 1)
    return y * scale + shift


if __name__ == "__main__":
    key = jax.random.PRNGKey(0)

    def make_params(k, cin, cout):
        kw, kg, kb, km, kv = jax.random.split(k, 5)
        conv_w = jax.random.normal(kw, (cout, cin, 1, 1), jnp.float32) * 0.1
        gamma = 1.0 + 0.1 * jax.random.normal(kg, (cout,), jnp.float32)
        beta = 0.1 * jax.random.normal(kb, (cout,), jnp.float32)
        mean = 0.05 * jax.random.normal(km, (cout,), jnp.float32)
        var = jnp.abs(1.0 + 0.1 * jax.random.normal(kv, (cout,), jnp.float32))
        return conv_w, gamma, beta, mean, var

    k1, k2 = jax.random.split(key)

    # Test 1: the module's demo sizes -- Downsample(inplanes=4, planes=8, stride=2).
    kx1, kp1 = jax.random.split(k1)
    N, Cin, H, W, Cout, stride = 2, 4, 16, 16, 8, 2
    x1 = jax.random.normal(kx1, (N, Cin, H, W), jnp.float32)
    p1 = make_params(kp1, Cin, Cout)
    out1 = jax.block_until_ready(downsample_pallas(x1, *p1, stride))
    ref1 = downsample_reference(x1, *p1, stride)
    assert out1.shape == (N, Cout, H // stride, W // stride), out1.shape
    err1 = float(jnp.max(jnp.abs(out1 - ref1)))
    assert err1 < 1e-4, err1

    # Test 2: larger channels (MXU path proper), f32.
    kx2, kp2 = jax.random.split(k2)
    N2, Cin2, H2, W2, Cout2, stride2 = 2, 64, 32, 32, 128, 2
    x2 = jax.random.normal(kx2, (N2, Cin2, H2, W2), jnp.float32)
    p2 = make_params(kp2, Cin2, Cout2)
    out2 = jax.block_until_ready(downsample_pallas(x2, *p2, stride2))
    ref2 = downsample_reference(x2, *p2, stride2)
    assert out2.shape == (N2, Cout2, H2 // stride2, W2 // stride2), out2.shape
    err2 = float(jnp.max(jnp.abs(out2 - ref2)))
    assert err2 < 1e-3, err2

    # Test 3: bf16 activations (f32 MXU accumulation) -- halves HBM read traffic.
    x2b = x2.astype(jnp.bfloat16)
    out3 = jax.block_until_ready(downsample_pallas(x2b, *p2, stride2))
    assert out3.dtype == jnp.bfloat16 and out3.shape == out2.shape
    err3 = float(jnp.max(jnp.abs(out3.astype(jnp.float32) - ref2)))
    assert err3 < 1e-1, err3

    print("KERNEL_OK")
</pallas_src>

<mosaic_0001>
module attributes {stable_mosaic.version = 11 : i64} {
  func.func @_conv1x1_bn_kernel(%arg0: i32, %arg1: i32, %arg2: memref<1x4x64xf32, #tpu.memory_space<vmem>>, %arg3: memref<8x4xf32, #tpu.memory_space<vmem>>, %arg4: memref<8x1xf32, #tpu.memory_space<vmem>>, %arg5: memref<1x8x64xf32, #tpu.memory_space<vmem>>) attributes {dimension_semantics = [#tpu.dimension_semantics<parallel>, #tpu.dimension_semantics<parallel>], iteration_bounds = array<i64: 2, 1>, scalar_prefetch = 0 : i64, scratch_operands = 0 : i64, tpu.core_type = #tpu.core_type<tc>, window_params = [{transform_indices = @transform_0, window_bounds = array<i64: 1, 4, 64>}, {pipeline_mode = #tpu.pipeline_mode<synchronous>, transform_indices = @transform_1, window_bounds = array<i64: 8, 4>}, {pipeline_mode = #tpu.pipeline_mode<synchronous>, transform_indices = @transform_2, window_bounds = array<i64: 8, 1>}, {transform_indices = @transform_3, window_bounds = array<i64: 1, 8, 64>}]} {
    %c0 = arith.constant 0 : index
    %c0_0 = arith.constant 0 : index
    %c0_1 = arith.constant 0 : index
    %0 = vector.load %arg2[%c0, %c0_0, %c0_1] : memref<1x4x64xf32, #tpu.memory_space<vmem>>, vector<1x4x64xf32>
    %1 = vector.shape_cast %0 : vector<1x4x64xf32> to vector<4x64xf32>
    %c0_2 = arith.constant 0 : index
    %c0_3 = arith.constant 0 : index
    %2 = vector.load %arg3[%c0_2, %c0_3] : memref<8x4xf32, #tpu.memory_space<vmem>>, vector<8x4xf32>
    %cst = arith.constant dense<0.000000e+00> : vector<8x64xf32>
    %3 = tpu.matmul %2, %1, %cst {dimension_numbers = #tpu.dot_dimension_numbers<[1], [0], [0], [1], [0, 0, 1, 1], [], []>} : vector<8x4xf32>, vector<4x64xf32>, vector<8x64xf32> -> vector<8x64xf32>
    %c0_4 = arith.constant 0 : index
    %c0_5 = arith.constant 0 : index
    %4 = vector.load %arg4[%c0_4, %c0_5] : memref<8x1xf32, #tpu.memory_space<vmem>>, vector<8x1xf32>
    %5 = vector.broadcast %4 : vector<8x1xf32> to vector<8x64xf32>
    %6 = arith.addf %3, %5 : vector<8x64xf32>
    %c0_6 = arith.constant 0 : index
    %c0_7 = arith.constant 0 : index
    %c0_8 = arith.constant 0 : index
    %7 = vector.load %arg5[%c0_6, %c0_7, %c0_8] : memref<1x8x64xf32, #tpu.memory_space<vmem>>, vector<1x8x64xf32>
    %8 = vector.shape_cast %7 : vector<1x8x64xf32> to vector<8x64xf32>
    %9 = vector.shape_cast %6 : vector<8x64xf32> to vector<1x8x64xf32>
    tpu.vector_store %arg5[%c0_6, %c0_7, %c0_8], %9 {strides = array<i32>} : memref<1x8x64xf32, #tpu.memory_space<vmem>>, vector<1x8x64xf32>,
    return
  }
  func.func @transform_0(%arg0: i32, %arg1: i32) -> (i32, i32, i32) {
    %c0_i32 = arith.constant 0 : i32
    %c0_i32_0 = arith.constant 0 : i32
    return %arg0, %c0_i32, %arg1 : i32, i32, i32
  }
  func.func @transform_1(%arg0: i32, %arg1: i32) -> (i32, i32) {
    %c0_i32 = arith.constant 0 : i32
    %c0_i32_0 = arith.constant 0 : i32
    %c0_i32_1 = arith.constant 0 : i32
    return %c0_i32, %c0_i32_0 : i32, i32
  }
  func.func @transform_2(%arg0: i32, %arg1: i32) -> (i32, i32) {
    %c0_i32 = arith.constant 0 : i32
    %c0_i32_0 = arith.constant 0 : i32
    %c0_i32_1 = arith.constant 0 : i32
    return %c0_i32, %c0_i32_0 : i32, i32
  }
  func.func @transform_3(%arg0: i32, %arg1: i32) -> (i32, i32, i32) {
    %c0_i32 = arith.constant 0 : i32
    %c0_i32_0 = arith.constant 0 : i32
    return %arg0, %c0_i32, %arg1 : i32, i32, i32
  }
}

</mosaic_0001>

<bundles_post_ra>
// kernel: tpu_custom_call.1
= control target key start
LH: loop header
LB: loop body
LE: loop exit
PB: predicated region body
PF: predicated region fallthrough
CT: control target
= control target key end

     0   :  { %8 = vsyncpa [#allocation3], 0  ;;  %s591_s0 = inlined_call_operand.vmem [shape: f32[2,4,64], index: 0, kind: input, shape index: {}]   ;;  %s592_s1 = inlined_call_operand.vmem [shape: f32[8,4], index: 1, kind: input, shape index: {}]   ;;  %s593_s2 = inlined_call_operand.vmem [shape: f32[8,1], index: 2, kind: input, shape index: {}]   ;;  %s594_s3 = inlined_call_operand.hbm [shape: f32[2,8,64], index: 3, kind: output, shape index: {}]  }
   0x1   :  { %10 = vsyncpa [#allocation3 + $0x1], 0  ;;  %s488_s12 = smov 0   ;;  %s490_s13 = smov 0  }
   0x2   :  { %s492_s14 = smov 0   ;;  %s494_s15 = smov 0  }
   0x3   :  { %s496_s16 = smov 0   ;;  %s498_s17 = smov 0  }
   0x4 LB: > { %s317_s18 = sadd.s32 4294967295, %s465_s17   ;;  %s318_s19 = sadd.s32 4294967294, %s465_s17   ;;  %s465_s17 = sphi %s498_s17, %s16_s17   ;;  %s461_s16 = sphi %s496_s16, %s601_s16   ;;  %s457_s15 = sphi %s494_s15, %s600_s15   ;;  %s453_s14 = sphi %s492_s14, %s599_s14   ;;  %s449_s13 = sphi %s490_s13, %s598_s13   ;;  %s445_s12 = sphi %s488_s12, %s597_s12  }
   0x5   : > { %s28_s20 = sadd.s32 1, %s461_s16  ;;  %s107_s21 = sadd.s32 1, %s453_s14 }
   0x6   : > { %p30_p0 = scmp.ge.s32.totalorder %s28_s20, 2  ;;  %p117_p1 = scmp.ne.s32.totalorder %s453_s14, %s449_s13 }
   0x7   : > { %p118_p2 = scmp.eq.s32.totalorder %s317_s18, 1  ;;  %p123_p3 = scmp.ne.s32.totalorder %s449_s13, %s445_s12 }
   0x8   : > { %s603_s20 = smov (%p30_p0, %s28_s20), 0  ;;  %p124_p5 = scmp.eq.s32.totalorder %s318_s19, 1 }
   0x9   : > { %p528_p4 = por %p118_p2, %p117_p1  ;;  %s102_s23 = ssub.s32 %s461_s16, %s603_s20 }
   0xa   : > { %p321_p6 = scmp.ge.s32.totalorder %s465_s17, 1  ;;  %p105_p7 = scmp.eq.s32.totalorder %s102_s23, 0 }
   0xb   : > { %p535_p8 = por %p124_p5, %p123_p3  ;;  %p158_p9 = scmp.lt.s32.totalorder %s465_s17, 3 }
   0xc   : > { %s541_s25 = scalar_select %p105_p7, %s453_s14, %s107_s21  }
   0xd   : > { %p159_p10 = pnand %p321_p6, %p158_p9 }
   0xe   : > { %p184_p11 = scmp.lt.s32.totalorder (!%p159_p10), %s457_s15, 1  ;;  %s181_s8 = sand.u32 (!%p159_p10), 1, %s449_s13  }
   0xf   : > { %162 = sbr.rel (%p159_p10) target bundleno = 157 (0x9d), region = 32  ;;  %s322_s9 = sshll.u32 (!%p159_p10), %s181_s8, 3 }
  0x10   : > { %s327_s10 = sshll.u32 (!%p159_p10), %s457_s15, 3  ;;  %s183_s21 = scalar_lea.vmem (!%p159_p10), [#allocation2], %s322_s9 }
  0x11   : > { %s241_s19 = scalar_lea.hbm (!%p159_p10), %s594_s3, %s327_s10  ;;  %s243_s23 = sshll.u32 (!%p159_p10), %s183_s21, 4  ;;  %s244_s23 = int_to_ptr.vmem [resolvable:$true] %s243_s23 }
  0x12   : > { %s245_s26 = sshll.u32 (!%p159_p10), %s241_s19, 4  ;;  %s230_s27 = scalar_lea.sflag (!%p159_p10), [#allocation3], %s181_s8  ;;  %s246_s26 = int_to_ptr.hbm [resolvable:$true] %s245_s26 }
  0x13   : > { %s407_s4 = scalar_lea.hbm (!%p159_p10), %s594_s3, 16 }
  0x14   : > { %v193_v0 = vld [vmem:[%s593_s2] sm:$0xff]  ;;  %v467_v1 = vmov 0   ;;  %s185_s28 = scalar_select %p184_p11, %s457_s15, 1  ;;  %vm203_vm0 = vcmask 1043456   ;;  %vm199_vm1 = vcmask 31744   ;;  %vm227_vm2 = vcmask 523264  }
  0x15   : > { %386 = vset.pattern.permute.xlu0 %v467_v1  ;;  %v192_v2 = vld [vmem:[%s592_s1] sm:$0xff] }
  0x16   : > { %196 = vperm.xlu0 %386, %v193_v0   ;;  %s323_s29 = sshll.u32 %s185_s28, 2  ;;  %s401_s28 = sshra.s32 %s246_s26, 4  ;;  %s402_s28 = int_to_ptr.hbm [resolvable:$true] %s401_s28 }
  0x17   : > { %s190_s5 = scalar_lea.vmem %s591_s0, %s323_s29  ;;  %s403_s29 = scalar_lea.hbm %s402_s28, 8 }
  0x18   : > { %v191_v3 = vld [vmem:[%s190_s5] sm:$0xf]  ;;  %p404_p12 = scmp.ne.s32.totalorder %s402_s28, %s403_s29  ;;  %p408_p1 = scmp.lt.s32.totalorder %s402_s28, %s594_s3 }
  0x19   : > { %324 = vmatpush.msk.msra.mxu0 %vm203_vm0, %v191_v3  ;;  %p409_p2 = scmp.lt.s32.totalorder %s407_s4, %s403_s29 }
  0x1a   : > { %325 = vmatmul.msk.f32.vlgmr.msra.gmra.mxu0 %vm199_vm1, %v192_v2  ;;  %p405_p13 = pnand %p404_p12, %p528_p4 }
  0x1b   : > { %p410_p3 = por %p409_p2, %p408_p1 }
  0x1c   : > { %p406_p0 = pneg %p405_p13 }
  0x1e   : > { %p411_p5 = pnand %p410_p3, %p406_p0 }
  0x88   : > { %v197_v4 = vpop.permute.xlu0 %196 }
  0x97   : > { %v224_v5 = vpop.f32.mrf.mxu0 }
  0x98   : > { %v225_v6 = vadd.f32 %v224_v5, %v197_v4 }
  0x9a   : > { %228 = vst.msk [vmem:[%s183_s21] sm:$0xff] %vm227_vm2, %v225_v6 }
  0x9b   : > { %414 = shalt.err (!%p411_p5)
}
  0x9c   : > { %330 = dma.vmem_to_hbm [thread:$0]  (%p528_p4), %s244_s23, 128, %s246_s26, %s230_s27  }
  0x9d PF: > { %p336_p6 = scmp.ge.s32.totalorder %s465_s17, 2  ;;  %s257_s7 = sand.u32 1, %s445_s12  }
  0x9e   : > { %s258_s8 = scalar_lea.sflag [#allocation3], %s257_s7 }
  0x9f   : > { %p333_p7 = pnand %p336_p6, %p535_p8 }
  0xa1   : > { %p334_p9 = pneg %p333_p7 }
  0xa3   : > { %440 = dma.done.wait (%p334_p9), %s258_s8, 128  }
  0xa4   : > { %442 = vsyncadd (%p334_p9), %s258_s8, 4294967168  ;;  %s16_s17 = sadd.s32 1, %s465_s17   ;;  %s597_s12 = smov %s449_s13 }
  0xa5   : > { %p13_p10 = scmp.ge.s32.totalorder %s16_s17, 4   ;;  %s598_s13 = smov %s453_s14 }
  0xa6   : > { %s599_s14 = smov %s541_s25  ;;  %s600_s15 = smov %s461_s16 }
  0xa7   : > { %s601_s16 = smov %s603_s20  ;;  %15 = sbr.rel (!%p13_p10) target bundleno = 4 (0x4), region = 67 }
  0xac   :  { %264 = vsyncpa [#allocation3], 1 }
  0xad   :  { %266 = vsyncpa [#allocation3 + $0x1], 1 }

</bundles_post_ra>
